<compile_context>
chip_gen: v6e
topology: v6e:2x2x1
jax: 0.10.0
libtpu: 0.0.40
codegen_flags: <defaults>
</compile_context>

<pallas_src>
import functools
import math

import jax
import jax.numpy as jnp
from jax.experimental import pallas as pl
from jax.experimental.pallas import tpu as pltpu


def _round_up(x, m):
    return ((x + m - 1) // m) * m


def _nnce_kernel(x_ref, t_ref, rows_ref, *, a_const, n_rows, tile_n):
    """One (tile_n, C) row tile -> (tile_n, 1) masked per-row NNCE."""
    i = pl.program_id(0)

    x = x_ref[...].astype(jnp.float32)            # (tile_n, C) logits
    t = t_ref[...]                                # (tile_n, 1) int32 targets

    # Log-space softmax: logp = (x - m) - log(sum(exp(x - m))).
    m = jnp.max(x, axis=1, keepdims=True)
    xm = x - m
    lse = jnp.log(jnp.sum(jnp.exp(xm), axis=1, keepdims=True))   # (tile_n, 1)
    # g = A + clip(logp, log(min_prob), 0) = max(A + logp, 0); upper clamp is
    # automatic since logp <= 0.
    g = jnp.maximum(a_const + (xm - lse), 0.0)                   # (tile_n, C)

    # Gather g at the target class via where-select (no one-hot multiply).
    col = jax.lax.broadcasted_iota(jnp.int32, x.shape, 1)
    num = jnp.sum(jnp.where(col == t, g, 0.0), axis=1, keepdims=True)  # (tile_n, 1)
    den = jnp.sum(g, axis=1, keepdims=True)                            # (tile_n, 1)

    # NOTE: if C >= 1/min_prob every p clips to min_prob and den == 0 -> NaN,
    # matching the PyTorch reference's behavior (kept intentionally).
    nnce_rows = 1.0 - num / den                                        # (tile_n, 1)

    # Mask padded tail rows of the last (ragged) tile. jnp.where is a
    # bit-select, so NaN/Inf from garbage pad rows cannot leak.
    row = jax.lax.broadcasted_iota(jnp.int32, nnce_rows.shape, 0) + i * tile_n
    rows_ref[...] = jnp.where(row < n_rows, nnce_rows, 0.0)


def _pick_tile_and_vmem(n, c, itemsize, tile_n=None):
    """VMEM- and dtype-aware row-tile size plus an explicit vmem limit."""
    # Sublane packing: 8 rows for 4-byte, 16 for 2-byte, 32 for 1-byte dtypes.
    sub = max(8, 32 // max(1, itemsize))

    try:
        phys = int(getattr(pltpu.get_tpu_info(), "vmem_capacity_bytes", 64 << 20))
    except Exception:  # pragma: no cover - conservative fallback (v7x = 64 MiB)
        phys = 64 << 20

    if tile_n is None:
        # Budget for double-buffered logits blocks + in-tile f32 working set:
        # at most ~half of physical VMEM (32 MiB on v7x, 48 MiB on v5e/v6e).
        block_budget = min(phys // 2, 48 << 20)
        per_row = 2 * c * itemsize + 4 * (4 * c)   # 2 input buffers + ~4 f32 temps
        tile_n = max(sub, (block_budget // per_row) // sub * sub)
        tile_n = min(tile_n, 1024)                 # per-step overhead amortized long before
        tile_n = min(tile_n, _round_up(n, sub))    # don't over-tile tiny batches
    tile_n = max(sub, _round_up(int(tile_n), sub))

    # Explicit scoped-VMEM limit sized to the chosen blocks (generation-aware).
    logits_blk = tile_n * c * itemsize
    labels_blk = tile_n * 128 * 4                  # (tile_n, 1) i32 block, lane-padded
    out_blk = tile_n * 128 * 4
    work = 4 * tile_n * c * 4                      # f32 temporaries estimate
    need = 2 * (logits_blk + labels_blk + out_blk) + work + (4 << 20)
    vmem_limit = int(min(phys, max(need, 32 << 20)))
    return tile_n, vmem_limit


def nnce_loss(pred, labels, *, min_prob, tile_n=None):
    """JAX/Pallas equivalent of NormalizedNegativeCrossEntropy.forward.

    pred:   (N, C) float logits (class axis last -> TPU lanes)
    labels: (N,)   int class indices
    """
    n, c = pred.shape
    itemsize = jnp.dtype(pred.dtype).itemsize
    tile_n, vmem_limit = _pick_tile_and_vmem(n, c, itemsize, tile_n)

    t2 = labels.astype(jnp.int32).reshape(n, 1)

    num_tiles = pl.cdiv(n, tile_n)
    n_pad = num_tiles * tile_n
    a_const = float(-math.log(min_prob))

    kernel = functools.partial(
        _nnce_kernel, a_const=a_const, n_rows=n, tile_n=tile_n
    )

    rows = pl.pallas_call(
        kernel,
        out_shape=jax.ShapeDtypeStruct((n_pad, 1), jnp.float32),
        grid=(num_tiles,),
        in_specs=[
            pl.BlockSpec((tile_n, c), lambda i: (i, 0)),   # logits row tile
            pl.BlockSpec((tile_n, 1), lambda i: (i, 0)),   # targets row tile
        ],
        out_specs=pl.BlockSpec((tile_n, 1), lambda i: (i, 0)),  # per-row nnce (masked)
        compiler_params=pltpu.CompilerParams(
            dimension_semantics=("parallel",),             # no carried state -> megacore OK
            vmem_limit_bytes=vmem_limit,
        ),
    )(pred, t2)

    # Padded rows were written as exact zeros; divide by the true N.
    return jnp.sum(rows) / jnp.float32(n)


def _reference(pred, labels, min_prob):
    """Pure-JAX reference matching the PyTorch module."""
    num_classes = pred.shape[1]
    p = jax.nn.softmax(pred.astype(jnp.float32), axis=1)
    p = jnp.clip(p, min_prob, 1.0)
    a = -jnp.log(jnp.float32(min_prob))
    g = a + jnp.log(p)
    onehot = jax.nn.one_hot(labels, num_classes, dtype=g.dtype)
    nnce = 1.0 - jnp.sum(onehot * g, axis=1) / jnp.sum(g, axis=1)
    return nnce.mean()


if __name__ == "__main__":
    key = jax.random.PRNGKey(0)
    k1, k2, k3, k4 = jax.random.split(key, 4)

    MIN_PROB = 1e-4

    # Small shapes consistent with the module: batch N=8, num_classes C=32.
    N, C = 8, 32
    pred = jax.random.normal(k1, (N, C), dtype=jnp.float32)
    labels = jax.random.randint(k2, (N,), 0, C, dtype=jnp.int32)

    out = jax.block_until_ready(nnce_loss(pred, labels, min_prob=MIN_PROB))
    ref = _reference(pred, labels, MIN_PROB)
    assert jnp.allclose(out, ref, atol=1e-5, rtol=1e-5), (out, ref)

    # Multi-tile + ragged-tail path: grid > 1, masked last tile, parallel partials.
    N2, C2 = 20, 32
    pred2 = jax.random.normal(k3, (N2, C2), dtype=jnp.float32)
    labels2 = jax.random.randint(k4, (N2,), 0, C2, dtype=jnp.int32)

    out2 = jax.block_until_ready(nnce_loss(pred2, labels2, min_prob=MIN_PROB, tile_n=8))
    ref2 = _reference(pred2, labels2, MIN_PROB)
    assert jnp.allclose(out2, ref2, atol=1e-5, rtol=1e-5), (out2, ref2)

    print("KERNEL_OK")
</pallas_src>

<mosaic_0001>
module attributes {stable_mosaic.version = 11 : i64} {
  func.func @_nnce_kernel(%arg0: i32, %arg1: memref<8x32xf32, #tpu.memory_space<vmem>>, %arg2: memref<8x1xi32, #tpu.memory_space<vmem>>, %arg3: memref<8x1xf32, #tpu.memory_space<vmem>>) attributes {dimension_semantics = [#tpu.dimension_semantics<parallel>], iteration_bounds = array<i64: 1>, scalar_prefetch = 0 : i64, scratch_operands = 0 : i64, tpu.core_type = #tpu.core_type<tc>, window_params = [{transform_indices = @transform_0, window_bounds = array<i64: 8, 32>}, {transform_indices = @transform_1, window_bounds = array<i64: 8, 1>}, {transform_indices = @transform_2, window_bounds = array<i64: 8, 1>}]} {
    %c0 = arith.constant 0 : index
    %c0_0 = arith.constant 0 : index
    %0 = vector.load %arg1[%c0, %c0_0] : memref<8x32xf32, #tpu.memory_space<vmem>>, vector<8x32xf32>
    %c0_1 = arith.constant 0 : index
    %c0_2 = arith.constant 0 : index
    %1 = vector.load %arg2[%c0_1, %c0_2] : memref<8x1xi32, #tpu.memory_space<vmem>>, vector<8x1xi32>
    %cst = arith.constant dense<0xFF800000> : vector<8xf32>
    %2 = vector.multi_reduction <maximumf>, %0, %cst [1] : vector<8x32xf32> to vector<8xf32>
    %3 = vector.shape_cast %2 : vector<8xf32> to vector<8x1xf32>
    %4 = vector.broadcast %3 : vector<8x1xf32> to vector<8x32xf32>
    %5 = arith.subf %0, %4 : vector<8x32xf32>
    %6 = math.exp %5 : vector<8x32xf32>
    %cst_3 = arith.constant dense<0.000000e+00> : vector<8xf32>
    %7 = vector.multi_reduction <add>, %6, %cst_3 [1] : vector<8x32xf32> to vector<8xf32>
    %8 = vector.shape_cast %7 : vector<8xf32> to vector<8x1xf32>
    %9 = math.log %8 : vector<8x1xf32>
    %10 = vector.broadcast %9 : vector<8x1xf32> to vector<8x32xf32>
    %11 = arith.subf %5, %10 : vector<8x32xf32>
    %cst_4 = arith.constant 9.21034049 : f32
    %12 = vector.broadcast %cst_4 : f32 to vector<8x32xf32>
    %13 = arith.addf %12, %11 : vector<8x32xf32>
    %cst_5 = arith.constant 0.000000e+00 : f32
    %14 = vector.broadcast %cst_5 : f32 to vector<8x32xf32>
    %15 = arith.maximumf %13, %14 : vector<8x32xf32>
    %16 = tpu.iota {dimensions = array<i32: 1>} : vector<8x32xi32>
    %17 = vector.broadcast %1 : vector<8x1xi32> to vector<8x32xi32>
    %18 = arith.cmpi eq, %16, %17 : vector<8x32xi32>
    %cst_6 = arith.constant 0.000000e+00 : f32
    %19 = vector.broadcast %cst_6 : f32 to vector<8x32xf32>
    %20 = arith.select %18, %15, %19 : vector<8x32xi1>, vector<8x32xf32>
    %cst_7 = arith.constant dense<0.000000e+00> : vector<8xf32>
    %21 = vector.multi_reduction <add>, %20, %cst_7 [1] : vector<8x32xf32> to vector<8xf32>
    %22 = vector.shape_cast %21 : vector<8xf32> to vector<8x1xf32>
    %cst_8 = arith.constant dense<0.000000e+00> : vector<8xf32>
    %23 = vector.multi_reduction <add>, %15, %cst_8 [1] : vector<8x32xf32> to vector<8xf32>
    %24 = vector.shape_cast %23 : vector<8xf32> to vector<8x1xf32>
    %25 = arith.divf %22, %24 : vector<8x1xf32>
    %cst_9 = arith.constant 1.000000e+00 : f32
    %26 = vector.broadcast %cst_9 : f32 to vector<8x1xf32>
    %27 = arith.subf %26, %25 : vector<8x1xf32>
    %28 = tpu.iota {dimensions = array<i32: 0>} : vector<8x1xi32>
    %c8_i32 = arith.constant 8 : i32
    %29 = arith.muli %arg0, %c8_i32 : i32
    %30 = vector.broadcast %29 : i32 to vector<8x1xi32>
    %31 = arith.addi %28, %30 : vector<8x1xi32>
    %c8_i32_10 = arith.constant 8 : i32
    %32 = vector.broadcast %c8_i32_10 : i32 to vector<8x1xi32>
    %33 = arith.cmpi slt, %31, %32 : vector<8x1xi32>
    %cst_11 = arith.constant 0.000000e+00 : f32
    %34 = vector.broadcast %cst_11 : f32 to vector<8x1xf32>
    %35 = arith.select %33, %27, %34 : vector<8x1xi1>, vector<8x1xf32>
    %c0_12 = arith.constant 0 : index
    %c0_13 = arith.constant 0 : index
    %36 = vector.load %arg3[%c0_12, %c0_13] : memref<8x1xf32, #tpu.memory_space<vmem>>, vector<8x1xf32>
    tpu.vector_store %arg3[%c0_12, %c0_13], %35 {strides = array<i32>} : memref<8x1xf32, #tpu.memory_space<vmem>>, vector<8x1xf32>,
    return
  }
  func.func @transform_0(%arg0: i32) -> (i32, i32) {
    %c0_i32 = arith.constant 0 : i32
    %c0_i32_0 = arith.constant 0 : i32
    return %arg0, %c0_i32 : i32, i32
  }
  func.func @transform_1(%arg0: i32) -> (i32, i32) {
    %c0_i32 = arith.constant 0 : i32
    %c0_i32_0 = arith.constant 0 : i32
    return %arg0, %c0_i32 : i32, i32
  }
  func.func @transform_2(%arg0: i32) -> (i32, i32) {
    %c0_i32 = arith.constant 0 : i32
    %c0_i32_0 = arith.constant 0 : i32
    return %arg0, %c0_i32 : i32, i32
  }
}

</mosaic_0001>

<bundles_post_ra>
// kernel: tpu_custom_call.1
= control target key start
LH: loop header
LB: loop body
LE: loop exit
PB: predicated region body
PF: predicated region fallthrough
CT: control target
= control target key end

     0   :  { %vm13_vm0 = vcmask 261120   ;;  %v66_v2 = vmov 0   ;;  %v28_v10 = vlaneseq  ;;  %vm51_vm2 = vcmask 7168   ;;  %s95_s0 = inlined_call_operand.vmem [shape: f32[8,32], index: 0, kind: input, shape index: {}]   ;;  %s96_s1 = inlined_call_operand.vmem [shape: s32[8,1], index: 1, kind: input, shape index: {}]   ;;  %s97_s2 = inlined_call_operand.vmem [shape: f32[8,1], index: 2, kind: output, shape index: {}]  }
   0x1   :  { %v11_v0 = vld [vmem:[%s95_s0] sm:$0xff]  ;;  %58 = vset.pattern.permute.xlu1 %v66_v2  ;;  %59 = vset.pattern.permute.xlu0 %v66_v2 }
   0x2   :  { %v14_v1 = vsel %vm13_vm0, %v11_v0, -inf  ;;  %v12_v3 = vld [vmem:[%s96_s1] sm:$0xff]  ;;  %v29_v13 = vand.u32 127, %v28_v10 }
   0x3   :  { %15 = vmax.xlane.f32.xlu0 %v14_v1  ;;  %31 = vperm.xlu1 %58, %v12_v3  }
  0x7e   :  { %v32_v14 = vpop.permute.xlu1 %31 }
  0x7f   :  { %vm33_vm1 = vcmp.eq.s32.totalorder %v29_v13, %v32_v14 }
  0x8c   :  { %v16_v4 = vpop.xlane.xlu0 %15 }
  0x8d   :  { %v17_v5 = vsub.f32 %v11_v0, %v16_v4 }
  0x8f   :  { %v18_v6 = vmul.f32 1.442695, %v17_v5 }
  0x91   :  { %60 = vpow2.f32 %v18_v6 }
  0x9e   :  { %v61_v7 = vpop.eup %60 }
  0x9f   :  { %v20_v8 = vsel %vm13_vm0, %v61_v7, 0.0 }
  0xa0   :  { %21 = vadd.xlane.f32.xlu0 %v20_v8 }
 0x129   :  { %v22_v9 = vpop.xlane.xlu0 %21 }
 0x12a   :  { %62 = vlog2.f32 %v22_v9 }
 0x137   :  { %v63_v11 = vpop.eup %62 }
 0x138   :  { %v24_v12 = vmul.f32 0.6931472, %v63_v11 }
 0x13a   :  { %v25_v15 = vsub.f32 %v17_v5, %v24_v12 }
 0x13c   :  { %v26_v16 = vadd.f32 9.2103405, %v25_v15 }
 0x13e   :  { %v27_v17 = vmax.f32 %v26_v16, 0.0 }
 0x140   :  { %v38_v18 = vsel %vm13_vm0, %v27_v17, 0.0  ;;  %v34_v19 = vsel %vm33_vm1, %v27_v17, 0.0 }
 0x141   :  { %39 = vadd.xlane.f32.xlu1 %v38_v18  ;;  %v35_v20 = vsel %vm13_vm0, %v34_v19, 0.0 }
 0x142   :  { %36 = vadd.xlane.f32.xlu0 %v35_v20 }
 0x1ca   :  { %v40_v21 = vpop.xlane.xlu1 %39 }
 0x1cb   :  { %64 = vrcp.f32 %v40_v21  ;;  %v37_v23 = vpop.xlane.xlu0 %36 }
 0x1d8   :  { %v65_v22 = vpop.eup %64 }
 0x1d9   :  { %v42_v24 = vmul.f32 %v65_v22, %v37_v23 }
 0x1db   :  { %v43_v25 = vsub.f32 1.0, %v42_v24 }
 0x1dd   :  { %52 = vst.msk [vmem:[%s97_s2] sm:$0xff] %vm51_vm2, %v43_v25 }

</bundles_post_ra>
